<compile_context>
chip_gen: v7x
topology: tpu7x:2x2x1
jax: 0.10.0
libtpu: 0.0.40
codegen_flags: <defaults>
</compile_context>

<pallas_src>
import jax
import jax.numpy as jnp
from jax.experimental import pallas as pl
from jax.experimental.pallas import tpu as pltpu


_MIB = 1024 * 1024


def _vmem_budget_bytes():
    # Generation-aware scoped-VMEM budget: ~70% of per-core capacity
    # (64 MiB on v7x, 128 MiB on v5e/v6e), with a conservative fallback.
    try:
        cap = int(pltpu.get_tpu_info().vmem_capacity_bytes)
    except Exception:
        cap = 64 * _MIB
    return min(int(cap * 0.7), 96 * _MIB)


def _choose_pack(m, n):
    # Lane-packing factor for small N: fold k rows into one row so DMAs, VPU
    # ops and the MXU contraction dim are lane-dense.  k must divide M (so the
    # wrapper reshape is a zero-cost contiguous view) and satisfy k*N <= 128.
    kmax = max(1, 128 // max(n, 1))
    for k in range(min(kmax, m), 0, -1):
        if m % k == 0:
            return k
    return 1


def _choose_tm(m_rows, n_cols, in_itemsize, fixed_bytes, budget_bytes):
    # Per-row working set: 2 inputs x 2 pipeline buffers (native dtype) plus
    # ~3 f32 temporaries (d, cs_fwd, cs_rev) produced by the body.
    per_row = n_cols * (2 * 2 * in_itemsize + 3 * 4)
    avail = max(budget_bytes - fixed_bytes - 2 * _MIB, 8 * per_row)
    tm = avail // per_row
    tm = max(8, (tm // 8) * 8)

    # Keep >= 2 grid steps when there is enough work so the "parallel" axis
    # can be sharded across v7x's two TensorCores (no effect on v5e/v6e).
    if m_rows >= 16:
        half = (((m_rows + 1) // 2) + 7) // 8 * 8   # ceil(M/2) rounded up to 8
        tm = min(tm, max(8, half))

    if tm >= m_rows:
        return m_rows        # full-dim block (any size allowed)
    return tm                # strict tile: multiple of 8


def _make_kernel(m_rows, tm, packed, use_bf16):
    def kernel(pred_ref, target_ref, u_ref, out_ref):
        # Inputs arrive in native dtype; upcast in-kernel.
        d = pred_ref[...].astype(jnp.float32) - target_ref[...].astype(jnp.float32)

        if m_rows % tm != 0:
            # Zero rows of the padded edge tile so they don't poison the sum.
            row = jax.lax.broadcasted_iota(jnp.int32, (tm, 1), 0)
            valid = (pl.program_id(0) * tm + row) < m_rows
            d = jnp.where(valid, d, 0.0)

        u = u_ref[...]   # VMEM-resident operator (constant index_map)

        if packed:
            # u = [upper-tri | lower-tri] block-diagonal: one MXU matmul gives
            # every forward- AND reverse-prefix sum of each packed segment.
            cs = jnp.dot(d, u, preferred_element_type=jnp.float32)
            partial = jnp.sum(jnp.abs(cs))
        else:
            lhs = d.astype(jnp.bfloat16) if use_bf16 else d
            cs_fwd = jnp.dot(lhs, u, preferred_element_type=jnp.float32)
            # Reverse cumsum via total-minus-prefix (VPU) -- no second matmul.
            row_total = jnp.sum(d, axis=-1, keepdims=True)
            cs_rev = row_total - cs_fwd + d
            partial = jnp.sum(jnp.abs(cs_fwd) + jnp.abs(cs_rev))

        # Lane-dense aligned (8,128) partial block per grid step; the wrapper
        # reads element [0, 0] of each block.
        out_ref[...] = jnp.full((8, 128), partial, dtype=jnp.float32)

    return kernel


def binary_emd_loss(pred, target):
    assert pred.shape == target.shape
    n = int(pred.shape[-1])
    total_elems = int(pred.size)
    m = total_elems // n

    # Lane-pack small-N rows (zero-cost contiguous reshape, no HBM copy).
    k = _choose_pack(m, n)
    m_p, n_p = m // k, k * n
    pred2 = pred.reshape(m_p, n_p)
    target2 = target.reshape(m_p, n_p)

    packed = k > 1
    # bf16 MXU operands once the unpacked path is compute-bound (accumulation
    # stays f32 and the triangular operand is exact).
    use_bf16 = (not packed) and n >= 1024

    # Prefix-sum operator, built once in the wrapper; constant index_map keeps
    # it VMEM-resident (no per-step rebuild, no per-step re-DMA).
    u_dtype = jnp.bfloat16 if use_bf16 else jnp.float32
    idx = jnp.arange(n_p)
    seg = idx // n
    same = seg[:, None] == seg[None, :]
    row = idx[:, None]
    col = idx[None, :]
    upper = (same & (row <= col)).astype(u_dtype)
    if packed:
        lower = (same & (row >= col)).astype(u_dtype)
        u_mat = jnp.concatenate([upper, lower], axis=1)   # (n_p, 2*n_p)
    else:
        u_mat = upper                                      # (n, n)

    in_itemsize = jnp.dtype(pred.dtype).itemsize
    u_bytes = int(u_mat.size) * jnp.dtype(u_dtype).itemsize
    budget = _vmem_budget_bytes()
    tm = _choose_tm(m_p, n_p, in_itemsize, fixed_bytes=2 * u_bytes,
                    budget_bytes=budget)
    num_tiles = pl.cdiv(m_p, tm)

    partial_slab = pl.pallas_call(
        _make_kernel(m_p, tm, packed, use_bf16),
        out_shape=jax.ShapeDtypeStruct((num_tiles * 8, 128), jnp.float32),
        grid=(num_tiles,),
        in_specs=[
            pl.BlockSpec((tm, n_p), lambda i: (i, 0)),
            pl.BlockSpec((tm, n_p), lambda i: (i, 0)),
            pl.BlockSpec(u_mat.shape, lambda i: (0, 0)),
        ],
        out_specs=pl.BlockSpec((8, 128), lambda i: (i, 0)),
        compiler_params=pltpu.CompilerParams(
            dimension_semantics=("parallel",),
            vmem_limit_bytes=budget,
        ),
    )(pred2, target2, u_mat)

    # One per-tile partial sum per (8,128) block; finish the tiny reduce in JAX.
    partials = partial_slab.reshape(num_tiles, 8, 128)[:, 0, 0]
    total = jnp.sum(partials)
    return total / (2.0 * m * n)


def _reference(pred, target):
    # Pure-JAX reference mirroring the PyTorch forward exactly.
    l1 = lambda a, b: jnp.mean(jnp.abs(a - b))
    loss = l1(jnp.cumsum(pred, axis=-1), jnp.cumsum(target, axis=-1))
    loss = loss + l1(
        jnp.cumsum(jnp.flip(pred, axis=-1), axis=-1),
        jnp.cumsum(jnp.flip(target, axis=-1), axis=-1),
    )
    return loss / 2.0


if __name__ == "__main__":
    key = jax.random.PRNGKey(0)
    k1, k2 = jax.random.split(key)
    # Small shape consistent with the forward: (batch=2, channels=4, seq=16).
    pred = jax.random.uniform(k1, (2, 4, 16), dtype=jnp.float32)
    target = jax.random.uniform(k2, (2, 4, 16), dtype=jnp.float32)

    loss = jax.block_until_ready(binary_emd_loss(pred, target))
    ref = jax.block_until_ready(_reference(pred, target))
    assert jnp.allclose(loss, ref, rtol=1e-5, atol=1e-5), (loss, ref)
    print("KERNEL_OK")
</pallas_src>

<mosaic_0001>
module attributes {stable_mosaic.version = 11 : i64} {
  func.func @kernel(%arg0: i32, %arg1: memref<1x128xf32, #tpu.memory_space<vmem>>, %arg2: memref<1x128xf32, #tpu.memory_space<vmem>>, %arg3: memref<128x256xf32, #tpu.memory_space<vmem>>, %arg4: memref<8x128xf32, #tpu.memory_space<vmem>>) attributes {dimension_semantics = [#tpu.dimension_semantics<parallel>], iteration_bounds = array<i64: 1>, scalar_prefetch = 0 : i64, scratch_operands = 0 : i64, tpu.core_type = #tpu.core_type<tc>, window_params = [{transform_indices = @transform_0, window_bounds = array<i64: 1, 128>}, {transform_indices = @transform_1, window_bounds = array<i64: 1, 128>}, {pipeline_mode = #tpu.pipeline_mode<synchronous>, transform_indices = @transform_2, window_bounds = array<i64: 128, 256>}, {transform_indices = @transform_3, window_bounds = array<i64: 8, 128>}]} {
    %c0 = arith.constant 0 : index
    %c0_0 = arith.constant 0 : index
    %0 = vector.load %arg1[%c0, %c0_0] : memref<1x128xf32, #tpu.memory_space<vmem>>, vector<1x128xf32>
    %c0_1 = arith.constant 0 : index
    %c0_2 = arith.constant 0 : index
    %1 = vector.load %arg2[%c0_1, %c0_2] : memref<1x128xf32, #tpu.memory_space<vmem>>, vector<1x128xf32>
    %2 = arith.subf %0, %1 : vector<1x128xf32>
    %c0_3 = arith.constant 0 : index
    %c0_4 = arith.constant 0 : index
    %3 = vector.load %arg3[%c0_3, %c0_4] : memref<128x256xf32, #tpu.memory_space<vmem>>, vector<128x256xf32>
    %cst = arith.constant dense<0.000000e+00> : vector<1x256xf32>
    %4 = tpu.matmul %2, %3, %cst {dimension_numbers = #tpu.dot_dimension_numbers<[1], [0], [0], [1], [0, 0, 1, 1], [], []>} : vector<1x128xf32>, vector<128x256xf32>, vector<1x256xf32> -> vector<1x256xf32>
    %5 = math.absf %4 : vector<1x256xf32>
    %6 = vector.shape_cast %5 : vector<1x256xf32> to vector<1x1x256xf32>
    %cst_5 = arith.constant dense<0.000000e+00> : vector<1xf32>
    %7 = vector.multi_reduction <add>, %6, %cst_5 [1, 2] : vector<1x1x256xf32> to vector<1xf32>
    %8 = vector.shape_cast %7 : vector<1xf32> to vector<1x1x1xf32>
    %9 = vector.extract %8[0, 0, 0] : f32 from vector<1x1x1xf32>
    %10 = vector.broadcast %9 : f32 to vector<8x128xf32>
    %c0_6 = arith.constant 0 : index
    %c0_7 = arith.constant 0 : index
    %11 = vector.load %arg4[%c0_6, %c0_7] : memref<8x128xf32, #tpu.memory_space<vmem>>, vector<8x128xf32>
    tpu.vector_store %arg4[%c0_6, %c0_7], %10 {strides = array<i32>} : memref<8x128xf32, #tpu.memory_space<vmem>>, vector<8x128xf32>,
    return
  }
  func.func @transform_0(%arg0: i32) -> (i32, i32) {
    %c0_i32 = arith.constant 0 : i32
    %c0_i32_0 = arith.constant 0 : i32
    return %arg0, %c0_i32 : i32, i32
  }
  func.func @transform_1(%arg0: i32) -> (i32, i32) {
    %c0_i32 = arith.constant 0 : i32
    %c0_i32_0 = arith.constant 0 : i32
    return %arg0, %c0_i32 : i32, i32
  }
  func.func @transform_2(%arg0: i32) -> (i32, i32) {
    %c0_i32 = arith.constant 0 : i32
    %c0_i32_0 = arith.constant 0 : i32
    %c0_i32_1 = arith.constant 0 : i32
    return %c0_i32, %c0_i32_0 : i32, i32
  }
  func.func @transform_3(%arg0: i32) -> (i32, i32) {
    %c0_i32 = arith.constant 0 : i32
    %c0_i32_0 = arith.constant 0 : i32
    return %arg0, %c0_i32 : i32, i32
  }
}

</mosaic_0001>

<bundles_post_ra>
// kernel: tpu_custom_call.1
= control target key start
LH: loop header
LB: loop body
LE: loop exit
PB: predicated region body
PF: predicated region fallthrough
CT: control target
= control target key end

     0   :  { %8 = vsyncpa [#allocation3], 0  ;;  %s364_s0 = inlined_call_operand.hbm [shape: f32[1,128], index: 0, kind: input, shape index: {}]   ;;  %s365_s1 = inlined_call_operand.vmem [shape: f32[1,128], index: 1, kind: input, shape index: {}]   ;;  %s366_s2 = inlined_call_operand.hbm [shape: f32[128,256], index: 2, kind: input, shape index: {}]   ;;  %s367_s3 = inlined_call_operand.hbm [shape: f32[8,128], index: 3, kind: output, shape index: {}]  }
   0x1   :  { %9 = vsyncpa [#allocation6], 0 }
   0x2   :  { %10 = vsyncpa [#allocation4], 0  ;;  %s292_s12 = smov [#allocation2]   ;;  %s293_s14 = smov [#allocation5]  }
   0x3   :  { %s17_s13 = sshll.u32 %s292_s12, 4  ;;  %s28_s15 = sshll.u32 %s293_s14, 4  ;;  %s18_s13 = int_to_ptr.vmem [resolvable:$true] %s17_s13  ;;  %s318_s15 = int_to_ptr.vmem [resolvable:$true] %s28_s15 }
   0x4   :  { %s220_s18 = scalar_lea.hbm %s364_s0, 16 }
   0x5   :  { %p221_p0 = scmp.ne.s32.totalorder %s364_s0, %s220_s18  ;;  %p224_p1 = scmp.lt.u32.totalorder %s220_s18, %s364_s0 }
   0x7   :  { %p226_p2 = pnand %p224_p1, %p221_p0 }
   0x9   :  { %229 = shalt.err (!%p226_p2)
}
   0xa   :  { %s230_s23 = scalar_lea.vmem %s18_s13, 16  ;;  %s234_s24 = scalar_lea.vmem %s18_s13, 32 }
   0xb   :  { %p231_p3 = scmp.ne.s32.totalorder %s18_s13, %s230_s23  ;;  %p235_p4 = scmp.lt.s32.totalorder %s18_s13, %s18_s13 }
   0xc   :  { %p236_p5 = scmp.lt.s32.totalorder %s234_s24, %s230_s23 }
   0xe   :  { %p237_p6 = por %p236_p5, %p235_p4 }
  0x10   :  { %p238_p7 = pnand %p237_p6, %p231_p3 }
  0x12   :  { %241 = shalt.err (!%p238_p7)
}
  0x13   :  { %20 = dma.hbm_to_vmem [thread:$0]  %s364_s0, 16, %s18_s13, [#allocation3]  }
  0x14   :  { %s242_s29 = scalar_lea.hbm %s366_s2, 4096 }
  0x15   :  { %p243_p8 = scmp.ne.s32.totalorder %s366_s2, %s242_s29  ;;  %p246_p9 = scmp.lt.u32.totalorder %s242_s29, %s366_s2 }
  0x17   :  { %p248_p10 = pnand %p246_p9, %p243_p8 }
  0x19   :  { %251 = shalt.err (!%p248_p10)
}
  0x1a   :  { %s252_s7 = scalar_lea.vmem %s318_s15, 4096  ;;  %p257_p12 = scmp.lt.s32.totalorder %s318_s15, %s318_s15 }
  0x1b   :  { %p253_p11 = scmp.ne.s32.totalorder %s318_s15, %s252_s7  ;;  %p258_p13 = scmp.lt.s32.totalorder %s252_s7, %s252_s7 }
  0x1d   :  { %p259_p0 = por %p258_p13, %p257_p12 }
  0x1f   :  { %p260_p1 = pnand %p259_p0, %p253_p11 }
  0x21   :  { %263 = shalt.err (!%p260_p1)
}
  0x22   :  { %s294_s0 = smov 256   ;;  %s295_s8 = smov 16  }
  0x23   :  { %34 = dma.hbm_to_vmem [thread:$0]  %s366_s2, 4096, %s318_s15, [#allocation6], %s294_s0, %s294_s0, %s295_s8  }
  0x24   :  { %286 = dma.done.wait [#allocation3], 16  }
  0x25   :  { %287 = vsyncadd [#allocation3], 4294967280 }
  0x26   :  { %288 = dma.done.wait [#allocation6], 4096  }
  0x27   :  { %289 = vsyncadd [#allocation6], 4294963200  ;;  %v296_v0 = vmov 0.0   ;;  %v45_v1 = vld [vmem:[#allocation5 + $0x8] sm:$0xff]  ;;  %v47_v2 = vld [vmem:[#allocation5 + $0x18] sm:$0xff]  ;;  %vm149_vm0 = vcmask 1040384  }
  0x28   :  { %140 = vmatprep.mubr.f32.mxu0 %v296_v0  ;;  %v44_v3 = vld [vmem:[#allocation5] sm:$0xff]  ;;  %v180_v4 = vpack.c.bf16 %v47_v2, %v45_v1  ;;  %v46_v5 = vld [vmem:[#allocation5 + $0x10] sm:$0xff]  ;;  %v49_v6 = vld [vmem:[#allocation5 + $0x28] sm:$0xff] }
  0x29   :  { %v51_v7 = vld [vmem:[#allocation5 + $0x38] sm:$0xff]  ;;  %v182_v8 = vpack.c.bf16 %v46_v5, %v44_v3  ;;  %v48_v10 = vld [vmem:[#allocation5 + $0x20] sm:$0xff]  ;;  %v50_v11 = vld [vmem:[#allocation5 + $0x30] sm:$0xff] }
  0x2a   :  { %v184_v9 = vpack.c.bf16 %v51_v7, %v49_v6  ;;  %v53_v12 = vld [vmem:[#allocation5 + $0x48] sm:$0xff]  ;;  %181 = vmatprep.subr.bf16.mxu0 %v180_v4  ;;  %v55_v13 = vld [vmem:[#allocation5 + $0x58] sm:$0xff]  ;;  %v186_v14 = vpack.c.bf16 %v50_v11, %v48_v10  ;;  %v52_v16 = vld [vmem:[#allocation5 + $0x40] sm:$0xff] }
  0x2b   :  { %183 = vmatpush1.bf16.msra.mxu0 %v182_v8  ;;  %v188_v15 = vpack.c.bf16 %v55_v13, %v53_v12  ;;  %v54_v17 = vld [vmem:[#allocation5 + $0x50] sm:$0xff]  ;;  %v57_v18 = vld [vmem:[#allocation5 + $0x68] sm:$0xff]  ;;  %v59_v19 = vld [vmem:[#allocation5 + $0x78] sm:$0xff] }
  0x2c   :  { %185 = vmatprep.subr.bf16.mxu0 %v184_v9  ;;  %v190_v20 = vpack.c.bf16 %v54_v17, %v52_v16  ;;  %v192_v21 = vpack.c.bf16 %v59_v19, %v57_v18  ;;  %v56_v22 = vld [vmem:[#allocation5 + $0x60] sm:$0xff]  ;;  %v58_v23 = vld [vmem:[#allocation5 + $0x70] sm:$0xff]  ;;  %v61_v24 = vld [vmem:[#allocation5 + $0x88] sm:$0xff] }
  0x2d   :  { %v63_v25 = vld [vmem:[#allocation5 + $0x98] sm:$0xff]  ;;  %v194_v26 = vpack.c.bf16 %v58_v23, %v56_v22  ;;  %v60_v28 = vld [vmem:[#allocation5 + $0x80] sm:$0xff]  ;;  %v62_v29 = vld [vmem:[#allocation5 + $0x90] sm:$0xff] }
  0x2e   :  { %v196_v27 = vpack.c.bf16 %v63_v25, %v61_v24  ;;  %v65_v30 = vld [vmem:[#allocation5 + $0xa8] sm:$0xff]  ;;  %v67_v31 = vld [vmem:[#allocation5 + $0xb8] sm:$0xff]  ;;  %v198_v32 = vpack.c.bf16 %v62_v29, %v60_v28  ;;  %v64_v34 = vld [vmem:[#allocation5 + $0xa0] sm:$0xff] }
  0x2f   :  { %187 = vmatpush1.bf16.msra.mxu0 %v186_v14  ;;  %v200_v33 = vpack.c.bf16 %v67_v31, %v65_v30  ;;  %v66_v35 = vld [vmem:[#allocation5 + $0xb0] sm:$0xff]  ;;  %v69_v36 = vld [vmem:[#allocation5 + $0xc8] sm:$0xff]  ;;  %v71_v37 = vld [vmem:[#allocation5 + $0xd8] sm:$0xff] }
  0x30   :  { %189 = vmatprep.subr.bf16.mxu0 %v188_v15  ;;  %v202_v38 = vpack.c.bf16 %v66_v35, %v64_v34  ;;  %v204_v39 = vpack.c.bf16 %v71_v37, %v69_v36  ;;  %v68_v40 = vld [vmem:[#allocation5 + $0xc0] sm:$0xff]  ;;  %v70_v41 = vld [vmem:[#allocation5 + $0xd0] sm:$0xff]  ;;  %v73_v42 = vld [vmem:[#allocation5 + $0xe8] sm:$0xff] }
  0x31   :  { %v75_v43 = vld [vmem:[#allocation5 + $0xf8] sm:$0xff]  ;;  %v206_v44 = vpack.c.bf16 %v70_v41, %v68_v40  ;;  %v72_v46 = vld [vmem:[#allocation5 + $0xe0] sm:$0xff]  ;;  %v74_v47 = vld [vmem:[#allocation5 + $0xf0] sm:$0xff] }
  0x32   :  { %v208_v45 = vpack.c.bf16 %v75_v43, %v73_v42  ;;  %v210_v48 = vpack.c.bf16 %v74_v47, %v72_v46  ;;  %v41_v49 = vld [vmem:[#allocation2] sm:$0x1] }
  0x33   :  { %191 = vmatpush1.bf16.msra.mxu0 %v190_v20  ;;  %v42_v50 = vld [vmem:[%s365_s1] sm:$0x1]  ;;  %s297_s1 = smov [#allocation7]  }
  0x34   :  { %193 = vmatprep.subr.bf16.mxu0 %v192_v21  ;;  %v43_v51 = vsub.f32 %v41_v49, %v42_v50  ;;  %s170_s12 = sshll.u32 %s297_s1, 4  ;;  %s171_s12 = int_to_ptr.vmem [resolvable:$true] %s170_s12 }
  0x35   :  { %s264_s14 = scalar_lea.vmem %s171_s12, 128  ;;  %p269_p3 = scmp.lt.s32.totalorder %s171_s12, %s171_s12 }
  0x36   :  { %p265_p2 = scmp.ne.s32.totalorder %s171_s12, %s264_s14  ;;  %p270_p4 = scmp.lt.s32.totalorder %s264_s14, %s264_s14 }
  0x37   :  { %195 = vmatpush1.bf16.msra.mxu0 %v194_v26 }
  0x38   :  { %197 = vmatprep.subr.bf16.mxu0 %v196_v27  ;;  %p271_p5 = por %p270_p4, %p269_p3 }
  0x3a   :  { %p272_p6 = pnand %p271_p5, %p265_p2 }
  0x3b   :  { %199 = vmatpush1.bf16.msra.mxu0 %v198_v32 }
  0x3c   :  { %201 = vmatprep.subr.bf16.mxu0 %v200_v33 }
  0x3f   :  { %203 = vmatpush1.bf16.msra.mxu0 %v202_v38 }
  0x40   :  { %205 = vmatprep.subr.bf16.mxu0 %v204_v39 }
  0x43   :  { %207 = vmatpush1.bf16.msra.mxu0 %v206_v44 }
  0x44   :  { %209 = vmatprep.subr.bf16.mxu0 %v208_v45 }
  0x47   :  { %211 = vmatpush1.bf16.msra.mxu0 %v210_v48 }
  0x4a   :  { %141 = vmatmul.mubr.f32.vlgmr.msra.gmra.mrb[0].mxu0 %v43_v51 }
 0x11d   :  { %v142_v52 = vpop.f32.mrb[0].mxu0 }
 0x11e   :  { %v147_v53 = vand.u32 2147483647, %v142_v52  ;;  %v144_v54 = vpop.f32.mrb[1].mxu0 }
 0x11f   :  { %v148_v55 = vand.u32 2147483647, %v144_v54 }
 0x120   :  { %v150_v56 = vsel %vm149_vm0, %v147_v53, 0.0 }
 0x121   :  { %v151_v57 = vsel %vm149_vm0, %v148_v55, 0.0 }
 0x122   :  { %v152_v58 = vadd.f32 %v151_v57, %v150_v56 }
 0x124   :  { %153 = vadd.xlane.f32.xlu0 %v152_v58 }
 0x1b1   :  { %v154_v59 = vpop.xlane.xlu0 %153 }
 0x1b2   :  { %v155_v60 = vrot.slane %v154_v59, 4 }
 0x1b4   :  { %v156_v61 = vadd.f32 %v155_v60, %v154_v59 }
 0x1b6   :  { %v157_v62 = vrot.slane %v156_v61, 2 }
 0x1b8   :  { %v158_v63 = vadd.f32 %v157_v62, %v156_v61 }
 0x1ba   :  { %v159_v0 = vrot.slane %v158_v63, 1 }
 0x1bc   :  { %v160_v1 = vadd.f32 %v159_v0, %v158_v63 }
 0x1be   :  { %212 = vpush %v160_v1 }
 0x1ef   :  { %s213_s13 = spop %212 }
 0x1f0   :  { %v162_v2 = vstv %s213_s13 }
 0x1f1   :  { %163 = vst [vmem:[#allocation7] sm:$0xff] %v162_v2 }
 0x1f2   :  { %275 = shalt.err (!%p272_p6)
}
 0x1f3   :  { %s276_s17 = scalar_lea.hbm %s367_s3, 128 }
 0x1f4   :  { %p277_p7 = scmp.ne.s32.totalorder %s367_s3, %s276_s17  ;;  %p280_p8 = scmp.lt.u32.totalorder %s276_s17, %s367_s3 }
 0x1f6   :  { %p282_p9 = pnand %p280_p8, %p277_p7 }
 0x1f8   :  { %285 = shalt.err (!%p282_p9)
}
 0x1f9   :  { %173 = dma.vmem_to_hbm [thread:$0]  %s171_s12, 128, %s367_s3, [#allocation4]  }
 0x1fa   :  { %290 = dma.done.wait [#allocation4], 128  }
 0x1fb   :  { %291 = vsyncadd [#allocation4], 4294967168 }
 0x1fc   :  { %177 = vsyncpa [#allocation3], 1 }
 0x1fd   :  { %178 = vsyncpa [#allocation6], 1 }
 0x1fe   :  { %179 = vsyncpa [#allocation4], 1 }

</bundles_post_ra>
